<compile_context>
chip_gen: v6e
topology: v6e:2x2x1
jax: 0.10.0
libtpu: 0.0.40
codegen_flags: <defaults>
</compile_context>

<pallas_src>
import functools

import jax
import jax.numpy as jnp
from jax.experimental import pallas as pl
from jax.experimental.pallas import tpu as pltpu

VMEM_LIMIT = 32 * 1024 * 1024      # explicit scoped-VMEM budget (safe on v5e/v6e/v7x)
MAX_ROW_TILE = 512                 # row tile for node/edge tiled kernels


# ---------------------------------------------------------------------------
# small helpers
# ---------------------------------------------------------------------------
def _round_up(x, m):
    return (x + m - 1) // m * m


def _row_tile(rows):
    # row tile must be a multiple of 8 (sublane); cap for VMEM friendliness
    return min(MAX_ROW_TILE, _round_up(rows, 8))


def _pad_rows(x, rows_padded):
    pad = rows_padded - x.shape[0]
    return x if pad == 0 else jnp.pad(x, ((0, pad), (0, 0)))


def _compiler_params(parallel=True):
    return pltpu.CompilerParams(
        dimension_semantics=("parallel",) if parallel else ("arbitrary",),
        vmem_limit_bytes=VMEM_LIMIT)


# ---------------------------------------------------------------------------
# Pallas kernels
# ---------------------------------------------------------------------------
def _matmul_bias_kernel(x_ref, w_ref, b_ref, o_ref, *, act):
    acc = jnp.dot(x_ref[...], w_ref[...], preferred_element_type=jnp.float32)
    acc = acc + b_ref[...]
    if act == "relu":
        acc = jnp.maximum(acc, 0.0)
    o_ref[...] = acc.astype(o_ref.dtype)


def matmul_bias(x, w, b=None, act=None, out_dtype=jnp.bfloat16):
    """Row-tiled y = x @ w + b; bf16 MXU inputs, f32 accumulation."""
    rows, k = x.shape
    nout = w.shape[1]
    tile = _row_tile(rows)
    rows_p = _round_up(rows, tile)
    xp = _pad_rows(x.astype(jnp.bfloat16), rows_p)
    bb = (jnp.zeros((1, nout), jnp.float32) if b is None
          else jnp.asarray(b, jnp.float32).reshape(1, nout))
    out = pl.pallas_call(
        functools.partial(_matmul_bias_kernel, act=act),
        out_shape=jax.ShapeDtypeStruct((rows_p, nout), out_dtype),
        grid=(rows_p // tile,),
        in_specs=[
            pl.BlockSpec((tile, k), lambda i: (i, 0)),
            pl.BlockSpec((k, nout), lambda i: (0, 0)),
            pl.BlockSpec((1, nout), lambda i: (0, 0)),
        ],
        out_specs=pl.BlockSpec((tile, nout), lambda i: (i, 0)),
        compiler_params=_compiler_params(parallel=True),
    )(xp, w.astype(jnp.bfloat16), bb)
    return out[:rows]


def _gat_edge_kernel(e_ref, zs_ref, zd_ref, we_ref, wpa_e_ref, wpa_s_ref, wpa_d_ref,
                     bpa_ref, bns_ref, bnb_ref, eout_ref, attn_ref, *, hd, residual):
    """All heads of one layer, one edge-row tile.

    e_ref [TE, Din], zs/zd [TE, H*D] (gathered source/dest node projections),
    we [Din, H*D] (lane-stacked fc_e), wpa_* [H*D, H*D + H] (block-diagonal fc_proj
    with attn_fc fused as the last H columns), bpa [1, H*D + H].
    """
    f32 = jnp.float32
    # z_e = fc_e(e), all heads stacked along the lane axis.
    z_e = jnp.dot(e_ref[...], we_ref[...], preferred_element_type=f32)
    # fc_proj + attn_fc fused: columns [0:hd] = e_proj, [hd:] = attention logits.
    proj = (jnp.dot(z_e.astype(jnp.bfloat16), wpa_e_ref[...], preferred_element_type=f32)
            + jnp.dot(zs_ref[...], wpa_s_ref[...], preferred_element_type=f32)
            + jnp.dot(zd_ref[...], wpa_d_ref[...], preferred_element_type=f32)
            + bpa_ref[...])
    e_proj = proj[:, :hd]
    attn = proj[:, hd:]
    attn = jnp.where(attn > 0, attn, 0.01 * attn)            # F.leaky_relu (slope 0.01)
    e_bn = e_proj * bns_ref[...] + bnb_ref[...]               # eval-mode BatchNorm
    e_act = jnp.where(e_bn > 0, e_bn, jnp.exp(jnp.minimum(e_bn, 0.0)) - 1.0)  # ELU
    if residual:
        e_act = e_act + e_ref[...].astype(f32)
    eout_ref[...] = e_act.astype(eout_ref.dtype)
    attn_ref[...] = attn


def gat_edge(e, z_src, z_dst, lp):
    rows, din = e.shape
    n_heads, d = lp["H"], lp["D"]
    hd = n_heads * d
    residual = bool(lp["residual"]) and din == hd
    tile = _row_tile(rows)
    rows_p = _round_up(rows, tile)
    e_p = _pad_rows(e.astype(jnp.bfloat16), rows_p)
    zs_p = _pad_rows(z_src.astype(jnp.bfloat16), rows_p)
    zd_p = _pad_rows(z_dst.astype(jnp.bfloat16), rows_p)
    e_out, attn = pl.pallas_call(
        functools.partial(_gat_edge_kernel, hd=hd, residual=residual),
        out_shape=(jax.ShapeDtypeStruct((rows_p, hd), jnp.bfloat16),
                   jax.ShapeDtypeStruct((rows_p, n_heads), jnp.float32)),
        grid=(rows_p // tile,),
        in_specs=[
            pl.BlockSpec((tile, din), lambda i: (i, 0)),
            pl.BlockSpec((tile, hd), lambda i: (i, 0)),
            pl.BlockSpec((tile, hd), lambda i: (i, 0)),
            pl.BlockSpec((din, hd), lambda i: (0, 0)),
            pl.BlockSpec((hd, hd + n_heads), lambda i: (0, 0)),
            pl.BlockSpec((hd, hd + n_heads), lambda i: (0, 0)),
            pl.BlockSpec((hd, hd + n_heads), lambda i: (0, 0)),
            pl.BlockSpec((1, hd + n_heads), lambda i: (0, 0)),
            pl.BlockSpec((1, hd), lambda i: (0, 0)),
            pl.BlockSpec((1, hd), lambda i: (0, 0)),
        ],
        out_specs=(pl.BlockSpec((tile, hd), lambda i: (i, 0)),
                   pl.BlockSpec((tile, n_heads), lambda i: (i, 0))),
        compiler_params=_compiler_params(parallel=True),
    )(e_p, zs_p, zd_p, lp["We"], lp["Wpa_e"], lp["Wpa_s"], lp["Wpa_d"],
      lp["b_pa"], lp["bne_s"], lp["bne_b"])
    return e_out[:rows], attn[:rows]


def _node_finalize_kernel(num_ref, den_ref, hin_ref, bns_ref, bnb_ref, o_ref, *, residual):
    f32 = jnp.float32
    den = den_ref[...]
    agg = jnp.where(den > 0, num_ref[...] / jnp.where(den > 0, den, 1.0), 0.0)
    h_bn = agg * bns_ref[...] + bnb_ref[...]                  # eval-mode BatchNorm
    h_act = jnp.where(h_bn > 0, h_bn, jnp.exp(jnp.minimum(h_bn, 0.0)) - 1.0)  # ELU
    if residual:
        h_act = h_act + hin_ref[...].astype(f32)
    o_ref[...] = h_act.astype(o_ref.dtype)


def node_finalize(num, den_full, h_in, lp):
    rows, hd = num.shape
    din = h_in.shape[1]
    residual = bool(lp["residual"]) and din == hd
    tile = _row_tile(rows)
    rows_p = _round_up(rows, tile)
    out = pl.pallas_call(
        functools.partial(_node_finalize_kernel, residual=residual),
        out_shape=jax.ShapeDtypeStruct((rows_p, hd), jnp.bfloat16),
        grid=(rows_p // tile,),
        in_specs=[
            pl.BlockSpec((tile, hd), lambda i: (i, 0)),
            pl.BlockSpec((tile, hd), lambda i: (i, 0)),
            pl.BlockSpec((tile, din), lambda i: (i, 0)),
            pl.BlockSpec((1, hd), lambda i: (0, 0)),
            pl.BlockSpec((1, hd), lambda i: (0, 0)),
        ],
        out_specs=pl.BlockSpec((tile, hd), lambda i: (i, 0)),
        compiler_params=_compiler_params(parallel=True),
    )(_pad_rows(num.astype(jnp.float32), rows_p),
      _pad_rows(den_full.astype(jnp.float32), rows_p),
      _pad_rows(h_in.astype(jnp.bfloat16), rows_p),
      lp["bnh_s"], lp["bnh_b"])
    return out[:rows]


def _readout_mlp_kernel(seg_ref, h_ref, inv_ref,
                        w1_ref, b1_ref, w2_ref, b2_ref, w3_ref, b3_ref, o_ref):
    f32, bf16 = jnp.float32, jnp.bfloat16
    hg = jnp.dot(seg_ref[...], h_ref[...], preferred_element_type=f32) * inv_ref[...]
    y = jnp.dot(hg.astype(bf16), w1_ref[...], preferred_element_type=f32) + b1_ref[...]
    y = jnp.maximum(y, 0.0)
    y = jnp.dot(y.astype(bf16), w2_ref[...], preferred_element_type=f32) + b2_ref[...]
    y = jnp.maximum(y, 0.0)
    o_ref[...] = jnp.dot(y.astype(bf16), w3_ref[...], preferred_element_type=f32) + b3_ref[...]


def readout_mlp(h, seg_oh, inv_counts, mlp):
    """dgl.mean_nodes + MLPReadout collapsed into a single pallas_call."""
    g, _ = seg_oh.shape
    (w1, b1), (w2, b2), (w3, b3) = mlp
    n_classes = w3.shape[1]

    def full(a):
        shp = a.shape
        return pl.BlockSpec(shp, lambda i, _n=len(shp): (0,) * _n)

    args = (seg_oh.astype(jnp.bfloat16), h.astype(jnp.bfloat16),
            inv_counts.reshape(g, 1).astype(jnp.float32),
            w1, b1, w2, b2, w3, b3)
    return pl.pallas_call(
        _readout_mlp_kernel,
        out_shape=jax.ShapeDtypeStruct((g, n_classes), jnp.float32),
        grid=(1,),
        in_specs=[full(a) for a in args],
        out_specs=pl.BlockSpec((g, n_classes), lambda i: (0, 0)),
        compiler_params=_compiler_params(parallel=False),
    )(*args)


# ---------------------------------------------------------------------------
# One CustomGATLayerEdgeReprFeat (all heads fused)
# ---------------------------------------------------------------------------
def gat_layer(h, e, src, dst, n_nodes, lp):
    n_heads, d = lp["H"], lp["D"]
    hd = n_heads * d
    n_edges = src.shape[0]

    # fc_h for all heads, lane-stacked (Pallas row-tiled matmul).
    z_h = matmul_bias(h, lp["Wh"], b=None, out_dtype=jnp.bfloat16)       # [N, H*D]

    # Index-based endpoint gather (replaces dense one-hot matmuls).
    z_src = jnp.take(z_h, src, axis=0)                                   # [E, H*D]
    z_dst = jnp.take(z_h, dst, axis=0)                                   # [E, H*D]

    # fc_e + fc_proj + attn_fc + BatchNorm + ELU (+ edge residual), all heads fused.
    e_out, attn = gat_edge(e, z_src, z_dst, lp)                          # [E,H*D],[E,H]

    # Per-destination softmax (stabilised with a per-destination max) and
    # softmax-weighted aggregation of source projections (XLA segment ops).
    m = jax.ops.segment_max(attn, dst, num_segments=n_nodes)             # [N, H]
    alpha = jnp.exp(attn - m[dst])                                        # [E, H]
    den = jax.ops.segment_sum(alpha, dst, num_segments=n_nodes)           # [N, H]
    msgs = alpha[:, :, None] * z_src.astype(jnp.float32).reshape(n_edges, n_heads, d)
    num = jax.ops.segment_sum(msgs.reshape(n_edges, hd), dst, num_segments=n_nodes)
    den_full = jnp.broadcast_to(den[:, :, None], (n_nodes, n_heads, d)).reshape(n_nodes, hd)

    # num/den + BatchNorm + ELU (+ node residual), fused in Pallas.
    h_out = node_finalize(num, den_full, h, lp)                           # [N, H*D]
    return h_out, e_out


# ---------------------------------------------------------------------------
# Parameter init (matching the module's __init__ shapes) + head packing
# ---------------------------------------------------------------------------
def init_linear(key, fan_in, fan_out, bias=True):
    k1, k2 = jax.random.split(key)
    bound = 1.0 / (fan_in ** 0.5)
    w = jax.random.uniform(k1, (fan_in, fan_out), jnp.float32, -bound, bound)
    b = (jax.random.uniform(k2, (fan_out,), jnp.float32, -bound, bound)
         if bias else jnp.zeros((fan_out,), jnp.float32))
    return w, b


def _pack_gat_layer(heads, d, n_heads, residual):
    """Pack per-head weights into lane-stacked / block-diagonal fused operands."""
    hd = n_heads * d
    w_h = jnp.concatenate([p["w_h"] for p in heads], axis=1)              # [Din, H*D]
    w_e = jnp.concatenate([p["w_e"] for p in heads], axis=1)              # [Din, H*D]
    wpa_e = jnp.zeros((hd, hd + n_heads), jnp.float32)
    wpa_s = jnp.zeros((hd, hd + n_heads), jnp.float32)
    wpa_d = jnp.zeros((hd, hd + n_heads), jnp.float32)
    b_pa = jnp.zeros((1, hd + n_heads), jnp.float32)
    for k, p in enumerate(heads):
        r = slice(k * d, (k + 1) * d)
        wp, wa = p["w_p"], p["w_a"]                                       # [3D,D], [3D,1]
        wpa_e = wpa_e.at[r, r].set(wp[0:d]).at[r, hd + k].set(wa[0:d, 0])
        wpa_s = wpa_s.at[r, r].set(wp[d:2 * d]).at[r, hd + k].set(wa[d:2 * d, 0])
        wpa_d = wpa_d.at[r, r].set(wp[2 * d:3 * d]).at[r, hd + k].set(wa[2 * d:3 * d, 0])
        b_pa = b_pa.at[0, r].set(p["b_p"])
    eps = 1e-5
    # fresh nn.BatchNorm1d, eval mode: gamma=1, beta=0, running_mean=0, running_var=1.
    # TODO(synk): training-mode BatchNorm (batch statistics) is not modelled.
    bn_s = jnp.full((1, hd), 1.0 / (1.0 + eps) ** 0.5, jnp.float32)
    bn_b = jnp.zeros((1, hd), jnp.float32)
    return dict(
        H=n_heads, D=d, residual=residual,
        Wh=w_h.astype(jnp.bfloat16), We=w_e.astype(jnp.bfloat16),
        Wpa_e=wpa_e.astype(jnp.bfloat16), Wpa_s=wpa_s.astype(jnp.bfloat16),
        Wpa_d=wpa_d.astype(jnp.bfloat16),
        b_pa=b_pa, bnh_s=bn_s, bnh_b=bn_b, bne_s=bn_s, bne_b=bn_b)


def init_params(key, in_dim, in_dim_edge, hidden_dim, out_dim, n_heads, n_classes, n_layers):
    keys = iter(jax.random.split(key, 512))
    params = {}
    w, b = init_linear(next(keys), in_dim, hidden_dim * n_heads)
    params["emb_h"] = (w.astype(jnp.bfloat16), b)
    w, b = init_linear(next(keys), in_dim_edge, hidden_dim * n_heads)
    params["emb_e"] = (w.astype(jnp.bfloat16), b)

    layers = []
    dim_in = hidden_dim * n_heads
    for layer_idx in range(n_layers):
        d, heads_n = (hidden_dim, n_heads) if layer_idx < n_layers - 1 else (out_dim, 1)
        heads = []
        for _ in range(heads_n):
            w_h, _ = init_linear(next(keys), dim_in, d, bias=False)
            w_e, _ = init_linear(next(keys), dim_in, d, bias=False)
            w_p, b_p = init_linear(next(keys), 3 * d, d, bias=True)
            w_a, _ = init_linear(next(keys), 3 * d, 1, bias=False)
            heads.append(dict(w_h=w_h, w_e=w_e, w_p=w_p, b_p=b_p, w_a=w_a))
        # TODO(synk): the reference's `edge_lr` flag has no effect on the forward
        # pass of CustomGATLayerEdgeReprFeat; it is ignored here.
        residual = dim_in == d * heads_n        # net_params['residual'] assumed True
        layers.append(_pack_gat_layer(heads, d, heads_n, residual))
        dim_in = d * heads_n
    params["layers"] = layers

    # MLPReadout: out_dim -> out_dim//2 -> out_dim//4 -> n_classes
    mlp = []
    dims = [out_dim, out_dim // 2, out_dim // 4, n_classes]
    for i in range(3):
        w, b = init_linear(next(keys), dims[i], dims[i + 1])
        mlp.append((w.astype(jnp.bfloat16), jnp.asarray(b, jnp.float32).reshape(1, -1)))
    params["mlp"] = mlp
    return params


# ---------------------------------------------------------------------------
# GATNet forward (hot paths in Pallas, gather/segment glue in XLA)
# ---------------------------------------------------------------------------
def gat_net_forward(params, h0, e0, src, dst, graph_id, n_nodes, n_graphs):
    h = matmul_bias(h0, *params["emb_h"])            # embedding_h
    e = matmul_bias(e0, *params["emb_e"])            # embedding_e
    # in_feat_dropout / dropout: identity (eval mode)

    for lp in params["layers"]:
        h, e = gat_layer(h, e, src, dst, n_nodes, lp)

    # dgl.mean_nodes + MLPReadout (single fused Pallas kernel)
    seg_oh = jax.nn.one_hot(graph_id, n_graphs, dtype=jnp.float32).T      # [G, N]
    counts = jnp.maximum(jnp.sum(seg_oh, axis=1), 1.0)
    return readout_mlp(h, seg_oh, 1.0 / counts, params["mlp"])


# ---------------------------------------------------------------------------
# Example run
# ---------------------------------------------------------------------------
if __name__ == "__main__":
    key = jax.random.PRNGKey(0)

    # net_params (small, consistent with the module)
    in_dim, in_dim_edge = 6, 3
    hidden_dim, out_dim = 8, 16
    n_heads, n_classes, n_layers = 2, 4, 2

    # Batched graph: 2 graphs x 6 nodes, bidirectional ring (every node in-degree 2)
    n_graphs, nodes_per_graph = 2, 6
    n_nodes = n_graphs * nodes_per_graph
    src_list, dst_list = [], []
    for g in range(n_graphs):
        off = g * nodes_per_graph
        for i in range(nodes_per_graph):
            src_list += [off + i, off + i]
            dst_list += [off + (i + 1) % nodes_per_graph,
                         off + (i - 1) % nodes_per_graph]
    n_edges = len(src_list)

    src = jnp.array(src_list, dtype=jnp.int32)
    dst = jnp.array(dst_list, dtype=jnp.int32)
    graph_id = jnp.array([g for g in range(n_graphs) for _ in range(nodes_per_graph)],
                         dtype=jnp.int32)

    kh, ke, kp = jax.random.split(key, 3)
    h0 = jax.random.normal(kh, (n_nodes, in_dim), jnp.float32)
    e0 = jax.random.normal(ke, (n_edges, in_dim_edge), jnp.float32)

    params = init_params(kp, in_dim, in_dim_edge, hidden_dim, out_dim,
                         n_heads, n_classes, n_layers)

    out = gat_net_forward(params, h0, e0, src, dst, graph_id, n_nodes, n_graphs)
    out = jax.block_until_ready(out)
    assert out.shape == (n_graphs, n_classes)
    assert bool(jnp.all(jnp.isfinite(out)))
    print("KERNEL_OK")
</pallas_src>

<mosaic_0001>
module attributes {stable_mosaic.version = 11 : i64} {
  func.func @_matmul_bias_kernel(%arg0: i32, %arg1: memref<16x6xbf16, #tpu.memory_space<vmem>>, %arg2: memref<6x16xbf16, #tpu.memory_space<vmem>>, %arg3: memref<1x16xf32, #tpu.memory_space<vmem>>, %arg4: memref<16x16xbf16, #tpu.memory_space<vmem>>) attributes {dimension_semantics = [#tpu.dimension_semantics<parallel>], iteration_bounds = array<i64: 1>, scalar_prefetch = 0 : i64, scratch_operands = 0 : i64, tpu.core_type = #tpu.core_type<tc>, window_params = [{transform_indices = @transform_0, window_bounds = array<i64: 16, 6>}, {pipeline_mode = #tpu.pipeline_mode<synchronous>, transform_indices = @transform_1, window_bounds = array<i64: 6, 16>}, {pipeline_mode = #tpu.pipeline_mode<synchronous>, transform_indices = @transform_2, window_bounds = array<i64: 1, 16>}, {transform_indices = @transform_3, window_bounds = array<i64: 16, 16>}]} {
    %c0 = arith.constant 0 : index
    %c0_0 = arith.constant 0 : index
    %0 = vector.load %arg1[%c0, %c0_0] : memref<16x6xbf16, #tpu.memory_space<vmem>>, vector<16x6xbf16>
    %c0_1 = arith.constant 0 : index
    %c0_2 = arith.constant 0 : index
    %1 = vector.load %arg2[%c0_1, %c0_2] : memref<6x16xbf16, #tpu.memory_space<vmem>>, vector<6x16xbf16>
    %cst = arith.constant dense<0.000000e+00> : vector<16x16xf32>
    %2 = tpu.matmul %0, %1, %cst {dimension_numbers = #tpu.dot_dimension_numbers<[1], [0], [0], [1], [0, 0, 1, 1], [], []>} : vector<16x6xbf16>, vector<6x16xbf16>, vector<16x16xf32> -> vector<16x16xf32>
    %c0_3 = arith.constant 0 : index
    %c0_4 = arith.constant 0 : index
    %3 = vector.load %arg3[%c0_3, %c0_4] : memref<1x16xf32, #tpu.memory_space<vmem>>, vector<1x16xf32>
    %4 = vector.broadcast %3 : vector<1x16xf32> to vector<16x16xf32>
    %5 = arith.addf %2, %4 : vector<16x16xf32>
    %6 = arith.truncf %5 : vector<16x16xf32> to vector<16x16xbf16>
    %c0_5 = arith.constant 0 : index
    %c0_6 = arith.constant 0 : index
    %7 = vector.load %arg4[%c0_5, %c0_6] : memref<16x16xbf16, #tpu.memory_space<vmem>>, vector<16x16xbf16>
    tpu.vector_store %arg4[%c0_5, %c0_6], %6 {strides = array<i32>} : memref<16x16xbf16, #tpu.memory_space<vmem>>, vector<16x16xbf16>,
    return
  }
  func.func @transform_0(%arg0: i32) -> (i32, i32) {
    %c0_i32 = arith.constant 0 : i32
    %c0_i32_0 = arith.constant 0 : i32
    return %arg0, %c0_i32 : i32, i32
  }
  func.func @transform_1(%arg0: i32) -> (i32, i32) {
    %c0_i32 = arith.constant 0 : i32
    %c0_i32_0 = arith.constant 0 : i32
    %c0_i32_1 = arith.constant 0 : i32
    return %c0_i32, %c0_i32_0 : i32, i32
  }
  func.func @transform_2(%arg0: i32) -> (i32, i32) {
    %c0_i32 = arith.constant 0 : i32
    %c0_i32_0 = arith.constant 0 : i32
    %c0_i32_1 = arith.constant 0 : i32
    return %c0_i32, %c0_i32_0 : i32, i32
  }
  func.func @transform_3(%arg0: i32) -> (i32, i32) {
    %c0_i32 = arith.constant 0 : i32
    %c0_i32_0 = arith.constant 0 : i32
    return %arg0, %c0_i32 : i32, i32
  }
}

</mosaic_0001>

<bundles_post_ra>
// kernel: tpu_custom_call.1
= control target key start
LH: loop header
LB: loop body
LE: loop exit
PB: predicated region body
PF: predicated region fallthrough
CT: control target
= control target key end

     0   :  { %vm35_vm0 = vcmask 1042432   ;;  %v150_v1 = vmov 0.0   ;;  %vm151_vm1 = vmmov 0   ;;  %vm31_vm2 = vcmask 48128   ;;  %s187_s0 = inlined_call_operand.vmem [shape: bf16[16,6], index: 0, kind: input, shape index: {}]   ;;  %s188_s1 = inlined_call_operand.vmem [shape: bf16[6,16], index: 1, kind: input, shape index: {}]   ;;  %s189_s2 = inlined_call_operand.vmem [shape: f32[1,16], index: 2, kind: input, shape index: {}]   ;;  %s190_s3 = inlined_call_operand.hbm [shape: bf16[16,16], index: 3, kind: output, shape index: {}]  }
   0x1   :  { %v18_v0 = vld [vmem:[%s188_s1] sm:$0x7]  ;;  %116 = vmatprep.subr.bf16.mxu0 %v150_v1  ;;  %118 = vmatprep.mubr.msk.bf16.mxu0 %vm151_vm1, %v150_v1 }
   0x2   :  { %v37_v2 = vsel %vm35_vm0, %v18_v0, 0  ;;  %v127_v3 = vld [vmem:[%s187_s0] sm:$0xff]  }
   0x3   :  { %117 = vmatpush3.bf16.msra.mxu0 %v37_v2 }
   0x4   :  { %8 = vsyncpa [#allocation3], 0  ;;  %v107_v4 = vld [vmem:[%s189_s2] ss:$0 sm:$0xff]  ;;  %vm88_vm3 = vcmask 125952   ;;  %s152_s1 = smov [#allocation2]  }
   0x5   :  { %s96_s18 = sshll.u32 %s152_s1, 4  ;;  %s97_s18 = int_to_ptr.vmem [resolvable:$true] %s96_s18 }
   0x6   :  { %119 = vmatmul.mubr.msk.bf16.vlgmr.msra.gmra.mxu0 %vm31_vm2, %v127_v3  ;;  %s128_s0 = scalar_lea.vmem %s97_s18, 128  ;;  %p133_p1 = scmp.lt.s32.totalorder %s97_s18, %s97_s18 }
   0x7   :  { %p129_p0 = scmp.ne.s32.totalorder %s97_s18, %s128_s0  ;;  %p134_p2 = scmp.lt.s32.totalorder %s128_s0, %s128_s0 }
   0x9   :  { %p135_p3 = por %p134_p2, %p133_p1 }
   0xb   :  { %p136_p4 = pnand %p135_p3, %p129_p0 }
  0xc6   :  { %v73_v5 = vpop.f32.mrf.mxu0 }
  0xc7   :  { %v74_v6 = vadd.f32 %v107_v4, %v73_v5 }
  0xc8   :  { %v120_v7 = vpop.f32.mrf.mxu0 }
  0xc9   :  { %v112_v8 = vpack.c.bf16 %v74_v6, %v74_v6 }
  0xca   :  { %v76_v9 = vpop.f32.mrf.mxu0 }
  0xcb   :  { %89 = vst.msk [vmem:[#allocation2] sm:$0xf] %vm88_vm3, %v112_v8  ;;  %v77_v10 = vadd.f32 %v107_v4, %v76_v9 }
  0xcc   :  { %v121_v11 = vpop.f32.mrf.mxu0 }
  0xcd   :  { %v113_v12 = vpack.c.bf16 %v77_v10, %v77_v10 }
  0xcf   :  { %90 = vst.msk [vmem:[#allocation2 + $0x4] sm:$0xf] %vm88_vm3, %v113_v12 }
  0xd0   :  { %139 = shalt.err (!%p136_p4)
}
  0xd1   :  { %s153_s2 = smov 64   ;;  %s154_s19 = smov 4  }
  0xd2   :  { %102 = dma.vmem_to_hbm [thread:$0]  %s97_s18, 128, %s190_s3, [#allocation3], %s153_s2, %s153_s2, %s154_s19  }
  0xd3   :  { %148 = dma.done.wait [#allocation3], 128  }
  0xd4   :  { %149 = vsyncadd [#allocation3], 4294967168 }
  0xd5   :  { %106 = vsyncpa [#allocation3], 1 }

</bundles_post_ra>
